<compile_context>
chip_gen: v5e
topology: v5e:2x2
jax: 0.10.0
libtpu: 0.0.40
codegen_flags: <defaults>
</compile_context>

<pallas_src>
import jax
import jax.numpy as jnp
from jax.experimental import pallas as pl
from jax.experimental.pallas import tpu as pltpu

_LANE = 128  # fast (lane) axis width; 128-wide rows -> unmasked full-vreg stores


# ----------------------------------------------------------------------------
# constants / reference / fused fallback
# ----------------------------------------------------------------------------
def _expgamma_constants(w_reg, dof, nu):
    """a, b and the folded constant c0 = a*log(b) - lgamma(a) (trace-time scalars)."""
    a = 0.5 * float(nu) * float(dof)
    b = 0.5 * float(nu) * float(w_reg)
    # Compute in f32 via jnp/lax so non-positive a/b propagate nan/-inf like the
    # reference (math.log/math.lgamma would raise), and precision matches f32.
    c0 = float(jnp.asarray(a, jnp.float32) * jnp.log(jnp.asarray(b, jnp.float32))
               - jax.lax.lgamma(jnp.asarray(a, jnp.float32)))
    return a, b, c0


def _expgamma_fused(x, a, b, c0):
    """Fused XLA elementwise path (small inputs / <128-element tails)."""
    xf = x.astype(jnp.float32)
    return (c0 + a * xf - b * jnp.exp(xf)).astype(x.dtype)


def _reference(log_energy, w_reg, dof, nu=1.0):
    """Faithful JAX transcription of the PyTorch expgamma_log_pdf (f32 math)."""
    x = jnp.asarray(log_energy).astype(jnp.float32)
    a = 0.5 * jnp.float32(nu) * jnp.float32(dof)
    b = 0.5 * jnp.float32(nu) * jnp.float32(w_reg)
    gamma_log_pdf = (a * jnp.log(b) + (a - 1.0) * x - b * jnp.exp(x)
                     - jax.lax.lgamma(a))
    return gamma_log_pdf + x


# ----------------------------------------------------------------------------
# kernel
# ----------------------------------------------------------------------------
def _make_expgamma_kernel(a, b, c0):
    """Elementwise kernel with the scalar constants baked in as immediates."""
    a = float(a)
    b = float(b)
    c0 = float(c0)

    def kernel(x_ref, o_ref):
        # Upcast (no-op for f32 inputs) -> compute in f32 -> store in out dtype.
        x = x_ref[...].astype(jnp.float32)
        # exp goes to the EUP slot; the rest is trivial VPU work (mem-bound op).
        o_ref[...] = (c0 + a * x - b * jnp.exp(x)).astype(o_ref.dtype)

    return kernel


def _default_block_rows():
    """Generation-aware default: 4 MiB f32 blocks on v6e/v7x, 2 MiB on v5e/older."""
    try:
        kind = jax.devices()[0].device_kind.lower()
    except Exception:  # pragma: no cover - conservative fallback
        return 4096
    if any(tag in kind for tag in ("v2", "v3", "v4", "v5")):
        # v5e scoped-VMEM default is 16 MiB; 4096x128xf32 blocks -> 8 MiB live.
        return 4096
    # v6e / v7x: 32 MiB scoped-VMEM default; 8192x128xf32 blocks -> ~16 MiB live.
    return 8192


# ----------------------------------------------------------------------------
# public wrapper
# ----------------------------------------------------------------------------
def log_energy_expgamma_prior(log_energy, w_reg, dof, nu=1.0, *,
                              block_rows=None, min_pallas_elems=1 << 20,
                              force_pallas=False, donate_input=False):
    """Equivalent of LogEnergyExpGammaPrior(w_reg, dof, nu).forward(log_energy).

    block_rows:       sublane rows per block; None -> generation-aware default.
    min_pallas_elems: below this size, use the fused jnp expression (XLA's
                      elementwise fusion already wins for tiny tensors).
    donate_input:     alias input slab to the output (caller donated the input).
    """
    # Module parameters are static Python scalars (nn.Module __init__); fold
    # them into constants at trace time.
    # TODO(synk): if w_reg/dof/nu ever become traced arrays (learnable=True),
    # route them through scalar prefetch instead of closure constants.
    a, b, c0 = _expgamma_constants(w_reg, dof, nu)

    x = jnp.asarray(log_energy)
    if x.dtype not in (jnp.float32, jnp.bfloat16, jnp.float16):
        x = x.astype(jnp.float32)
    orig_shape = x.shape
    dtype = x.dtype
    itemsize = jnp.dtype(dtype).itemsize          # 4 (f32) or 2 (bf16/f16)
    sublane = 8 if itemsize == 4 else 16          # (8,128) f32 / (16,128) bf16
    n = x.size

    if n == 0:
        return x
    if n < min_pallas_elems and not force_pallas:
        return _expgamma_fused(x, a, b, c0)

    flat = x.reshape(-1)                          # free, row-major
    rem = n % _LANE
    n_main = n - rem
    rows = n_main // _LANE

    if rows == 0:
        # Input smaller than one lane row: fused path handles everything.
        return _expgamma_fused(x, a, b, c0)

    # (rows, 128) slab over the 128-aligned prefix only; no full-array pad.
    slab = flat[:n_main].reshape(rows, _LANE)

    if block_rows is None:
        block_rows = _default_block_rows()
    tile_rows = min(int(block_rows), rows)
    if tile_rows < rows:
        # Multi-step grid: block shape must obey (sublane, 128) divisibility.
        tile_rows = max(sublane, (tile_rows // sublane) * sublane)
    grid = (pl.cdiv(rows, tile_rows),)            # partial last block is masked

    out_slab = pl.pallas_call(
        _make_expgamma_kernel(a, b, c0),
        out_shape=jax.ShapeDtypeStruct((rows, _LANE), dtype),
        grid=grid,
        in_specs=[pl.BlockSpec((tile_rows, _LANE), lambda i: (i, 0))],
        out_specs=pl.BlockSpec((tile_rows, _LANE), lambda i: (i, 0)),
        compiler_params=pltpu.CompilerParams(
            dimension_semantics=("parallel",),
        ),
        cost_estimate=pl.CostEstimate(
            flops=3 * n_main,               # 2 mul + 1 add-ish per element
            transcendentals=n_main,         # one exp per element
            bytes_accessed=2 * itemsize * n_main,
        ),
        input_output_aliases=({0: 0} if donate_input else {}),
    )(slab)

    main_out = out_slab.reshape(-1)
    if rem:
        # <128-element tail handled by the fused expression (no extra HBM pass
        # over the main body).
        tail_out = _expgamma_fused(flat[n_main:], a, b, c0)
        out = jnp.concatenate([main_out, tail_out])
    else:
        out = main_out
    return out.reshape(orig_shape)


# ----------------------------------------------------------------------------
# demo / checks
# ----------------------------------------------------------------------------
if __name__ == "__main__":
    key = jax.random.PRNGKey(0)
    k0, k1, k2, k3 = jax.random.split(key, 4)

    # Deterministic module parameters (module __init__ takes scalars).
    w_reg, dof, nu = 2.0, 5.0, 1.0

    # 1) NCHW-like log_energy (B, C, H, W) = (2, 4, 16, 16), f32 — single block.
    x = jax.random.normal(k0, (2, 4, 16, 16), dtype=jnp.float32)
    out = jax.block_until_ready(
        log_energy_expgamma_prior(x, w_reg, dof, nu, force_pallas=True))
    ref = _reference(x, w_reg, dof, nu)
    assert out.shape == x.shape and out.dtype == jnp.float32
    assert jnp.allclose(out, ref, atol=1e-4, rtol=1e-5), "mismatch (small f32)"

    # 2) Multi-step parallel grid with a masked partial last block:
    #    (2, 4, 40, 128) -> 320 rows, block_rows=48 -> 7 grid steps.
    x2 = jax.random.normal(k1, (2, 4, 40, 128), dtype=jnp.float32)
    out2 = jax.block_until_ready(
        log_energy_expgamma_prior(x2, w_reg, dof, nu,
                                  block_rows=48, force_pallas=True))
    ref2 = _reference(x2, w_reg, dof, nu)
    assert jnp.allclose(out2, ref2, atol=1e-4, rtol=1e-5), "mismatch (multi-block)"

    # 3) Unaligned length (3*43 = 129 elems): 1 aligned row via Pallas + 1-elem
    #    fused tail, no full-array pad.
    x3 = jax.random.normal(k2, (3, 43), dtype=jnp.float32)
    out3 = jax.block_until_ready(
        log_energy_expgamma_prior(x3, w_reg, dof, nu, force_pallas=True))
    ref3 = _reference(x3, w_reg, dof, nu)
    assert out3.shape == x3.shape
    assert jnp.allclose(out3, ref3, atol=1e-4, rtol=1e-5), "mismatch (tail)"

    # 4) bf16 input kept narrow end-to-end (halved HBM traffic), f32 math inside.
    x4 = jax.random.normal(k3, (2, 4, 32, 128), dtype=jnp.bfloat16)
    out4 = jax.block_until_ready(
        log_energy_expgamma_prior(x4, w_reg, dof, nu,
                                  block_rows=32, force_pallas=True))
    ref4 = _reference(x4, w_reg, dof, nu).astype(jnp.bfloat16)
    assert out4.dtype == jnp.bfloat16
    assert jnp.allclose(out4.astype(jnp.float32), ref4.astype(jnp.float32),
                        atol=5e-2, rtol=5e-2), "mismatch (bf16)"

    print("KERNEL_OK")
</pallas_src>

<mosaic_0001>
module attributes {stable_mosaic.version = 11 : i64} {
  func.func @kernel(%arg0: i32, %arg1: memref<16x128xf32, #tpu.memory_space<vmem>>, %arg2: memref<16x128xf32, #tpu.memory_space<vmem>>) attributes {dimension_semantics = [#tpu.dimension_semantics<parallel>], iteration_bounds = array<i64: 1>, scalar_prefetch = 0 : i64, scratch_operands = 0 : i64, tpu.core_type = #tpu.core_type<tc>, window_params = [{transform_indices = @transform_0, window_bounds = array<i64: 16, 128>}, {transform_indices = @transform_1, window_bounds = array<i64: 16, 128>}]} {
    %c0 = arith.constant 0 : index
    %c0_0 = arith.constant 0 : index
    %0 = vector.load %arg1[%c0, %c0_0] : memref<16x128xf32, #tpu.memory_space<vmem>>, vector<16x128xf32>
    %cst = arith.constant 2.500000e+00 : f32
    %1 = vector.broadcast %cst : f32 to vector<16x128xf32>
    %2 = arith.mulf %1, %0 : vector<16x128xf32>
    %cst_1 = arith.constant -2.846830e-01 : f32
    %3 = vector.broadcast %cst_1 : f32 to vector<16x128xf32>
    %4 = arith.addf %3, %2 : vector<16x128xf32>
    %5 = math.exp %0 : vector<16x128xf32>
    %cst_2 = arith.constant 1.000000e+00 : f32
    %6 = vector.broadcast %cst_2 : f32 to vector<16x128xf32>
    %7 = arith.mulf %6, %5 : vector<16x128xf32>
    %8 = arith.subf %4, %7 : vector<16x128xf32>
    %c0_3 = arith.constant 0 : index
    %c0_4 = arith.constant 0 : index
    %9 = vector.load %arg2[%c0_3, %c0_4] : memref<16x128xf32, #tpu.memory_space<vmem>>, vector<16x128xf32>
    tpu.vector_store %arg2[%c0_3, %c0_4], %8 {strides = array<i32>} : memref<16x128xf32, #tpu.memory_space<vmem>>, vector<16x128xf32>,
    return
  }
  func.func @transform_0(%arg0: i32) -> (i32, i32) {
    %c0_i32 = arith.constant 0 : i32
    %c0_i32_0 = arith.constant 0 : i32
    return %arg0, %c0_i32 : i32, i32
  }
  func.func @transform_1(%arg0: i32) -> (i32, i32) {
    %c0_i32 = arith.constant 0 : i32
    %c0_i32_0 = arith.constant 0 : i32
    return %arg0, %c0_i32 : i32, i32
  }
}

</mosaic_0001>

<bundles_post_ra>
// kernel: tpu_custom_call.1
= control target key start
LH: loop header
LB: loop body
LE: loop exit
PB: predicated region body
PF: predicated region fallthrough
CT: control target
= control target key end

     0   :  { %6 = vsyncpa [#allocation3], 0  ;;  %s138_s0 = inlined_call_operand.hbm [shape: f32[16,128], index: 0, kind: input, shape index: {}]   ;;  %s139_s1 = inlined_call_operand.hbm [shape: f32[16,128], index: 1, kind: output, shape index: {}]  }
   0x1   :  { %7 = vsyncpa [#allocation4], 0  ;;  %s12_s8 = sshll.u32 %s138_s0, 4  ;;  %s118_s9 = smov [#allocation2]   ;;  %s13_s8 = int_to_ptr.hbm [resolvable:$true] %s12_s8 }
   0x2   :  { %s14_s10 = sshll.u32 %s118_s9, 4  ;;  %s119_s11 = smov 128   ;;  %s15_s10 = int_to_ptr.vmem [resolvable:$true] %s14_s10 }
   0x3   :  { %s120_s12 = smov 8  }
   0x4   :  { %20 = dma.hbm_to_vmem [thread:$0]  %s13_s8, 256, %s15_s10, [#allocation3], %s119_s11, %s119_s11, %s120_s12  }
   0x5   :  { %114 = dma.done.wait [#allocation3], 256  }
   0x6   :  { %115 = vsyncadd [#allocation3], 4294967040  ;;  %v25_v0 = vld [vmem:[#allocation2] sm:$0xff]  ;;  %v26_v1 = vld [vmem:[#allocation2 + $0x8] sm:$0xff]  ;;  %s121_s0 = smov [#allocation5]   ;;  %s45_s16 = sshll.u32 %s139_s1, 4  ;;  %s46_s16 = int_to_ptr.hbm [resolvable:$true] %s45_s16 }
   0x7   :  { %v31_v2 = vmul.f32 1.442695, %v25_v0  ;;  %v33_v3 = vmul.f32 1.442695, %v26_v1  ;;  %v27_v4 = vmul.f32 2.5, %v25_v0  ;;  %v28_v5 = vmul.f32 2.5, %v26_v1 }
   0x8   :  { %s43_s13 = sshll.u32 %s121_s0, 4  ;;  %s44_s13 = int_to_ptr.vmem [resolvable:$true] %s43_s13 }
   0x9   :  { %62 = vpow2.f32 %v31_v2  ;;  %v29_v6 = vadd.f32 -0.284683, %v27_v4  ;;  %v30_v7 = vadd.f32 -0.284683, %v28_v5 }
   0xa   :  { %64 = vpow2.f32 %v33_v3 }
   0xf   :  { %v63_v8 = vpop.eup %62 }
  0x10   :  { %v65_v9 = vpop.eup %64  ;;  %v35_v10 = vsub.f32 %v29_v6, %v63_v8 }
  0x11   :  { %v36_v11 = vsub.f32 %v30_v7, %v65_v9 }
  0x12   :  { %37 = vst [vmem:[#allocation5] sm:$0xff] %v35_v10 }
  0x13   :  { %38 = vst [vmem:[#allocation5 + $0x8] sm:$0xff] %v36_v11 }
  0x14   :  { %51 = dma.vmem_to_hbm [thread:$0]  %s44_s13, 256, %s46_s16, [#allocation4], %s119_s11, %s119_s11, %s120_s12  }
  0x15   :  { %116 = dma.done.wait [#allocation4], 256  }
  0x16   :  { %117 = vsyncadd [#allocation4], 4294967040 }
  0x17   :  { %56 = vsyncpa [#allocation3], 1 }
  0x18   :  { %57 = vsyncpa [#allocation4], 1 }

</bundles_post_ra>
